<compile_context>
chip_gen: v5e
topology: v5e:2x2
jax: 0.10.0
libtpu: 0.0.40
codegen_flags: <defaults>
</compile_context>

<pallas_src>
import functools
import math

import jax
import jax.numpy as jnp
from jax.experimental import pallas as pl
from jax.experimental.pallas import tpu as pltpu


def _round_up(a: int, m: int) -> int:
    return (a + m - 1) // m * m


def _cross_attention_kernel(
    x_ref,      # (1, TQ, D)        bf16
    kt_ref,     # (1, D, Lkv_pad)   bf16   (K transposed, d-major)
    v_ref,      # (1, Lkv_pad, D)   bf16
    wq_ref,     # (D, D)            bf16   (1/sqrt(d_head) folded in)
    bq_ref,     # (1, D)            f32    (scaled)
    wo_ref,     # (D, D)            bf16
    bo_ref,     # (1, D)            f32
    o_ref,      # (1, TQ, D)        f32
    ctx_ref,    # (TQ, D)           f32    VMEM scratch
    *,
    n_heads: int,
    d_head: int,
    lkv_valid: int,
):
    f32 = jnp.float32
    bf16 = jnp.bfloat16

    x = x_ref[0]                                               # (TQ, D) bf16

    # ---- q projection (bf16 MXU, f32 accumulate); scale already folded ----
    q = (jnp.dot(x, wq_ref[...], preferred_element_type=f32)
         + bq_ref[...]).astype(bf16)                           # (TQ, D)

    lkv_pad = kt_ref.shape[2]

    # Mask bias for padded key columns (static decision; skipped if no pad).
    if lkv_valid < lkv_pad:
        col = jax.lax.broadcasted_iota(jnp.int32, (1, lkv_pad), 1)
        mask_bias = jnp.where(col < lkv_valid,
                              jnp.float32(0.0), jnp.float32(-1e30))
    else:
        mask_bias = None

    # ---- attention: static loop over heads, all operands 2-D --------------
    # Each head's context is stored into its slice of the VMEM scratch so the
    # head's s / p / ctx live ranges end at the store (no concatenate copy).
    for h in range(n_heads):
        sl = slice(h * d_head, (h + 1) * d_head)
        qh = q[:, sl]                                          # (TQ, dh) bf16
        kth = kt_ref[0, sl, :]                                 # (dh, Lkv_pad)
        vh = v_ref[0, :, sl]                                   # (Lkv_pad, dh)

        # scores: plain contraction, no kh transpose needed (K is d-major).
        s = jnp.dot(qh, kth, preferred_element_type=f32)       # (TQ, Lkv_pad)
        if mask_bias is not None:
            s = s + mask_bias

        m = jnp.max(s, axis=-1, keepdims=True)
        p = jnp.exp(s - m)
        denom = jnp.sum(p, axis=-1, keepdims=True)
        p = p * pl.reciprocal(denom, approx=True)              # EUP reciprocal

        ctx_ref[:, sl] = jnp.dot(p.astype(bf16), vh,
                                 preferred_element_type=f32)   # (TQ, dh) f32

    # ---- output projection -------------------------------------------------
    out = (jnp.dot(ctx_ref[...].astype(bf16), wo_ref[...],
                   preferred_element_type=f32) + bo_ref[...])
    o_ref[0] = out.astype(o_ref.dtype)


def cross_attention(x, y, params, n_heads: int, tq: int = 512):
    """x: (B, Lq, D), y: (B, Lkv, Dc).  Matches CrossAttention.forward."""
    orig_dtype = x.dtype
    B, Lq, D = x.shape
    _, Lkv, Dc = y.shape
    d_head = D // n_heads
    f32, bf16 = jnp.float32, jnp.bfloat16

    wq, bq, wk, bk, wv, bv, wo, bo = params

    # Fold 1/sqrt(d_head) into the q-projection constants (trace-time, free).
    scale = 1.0 / math.sqrt(d_head)
    wq_b = (wq.astype(f32) * scale).astype(bf16)
    bq2 = (bq.astype(f32) * scale).reshape(1, D)
    wo_b = wo.astype(bf16)
    bo2 = bo.astype(f32).reshape(1, D)

    # ---- q-tile / padding bookkeeping --------------------------------------
    TQ = min(tq, _round_up(Lq, 8))          # multiple of 8 (sublane)
    Lq_pad = _round_up(Lq, TQ)
    Lkv_pad = _round_up(Lkv, 128)           # lane-dense key axis
    n_q_tiles = Lq_pad // TQ

    x_b = x.astype(bf16)
    if Lq_pad != Lq:
        x_b = jnp.pad(x_b, ((0, 0), (0, Lq_pad - Lq), (0, 0)))
    y_b = y.astype(bf16)
    if Lkv_pad != Lkv:
        y_b = jnp.pad(y_b, ((0, 0), (0, Lkv_pad - Lkv), (0, 0)))

    # ---- K/V projection pre-pass: ONCE per batch element (not per q-tile) --
    # Plain XLA matmuls emitting bf16 K^T and V.  Keeping this out of the
    # attention pallas_call lets both of its grid axes stay "parallel"
    # (important on v7x, where the q-tile axis is the only one wide enough to
    # shard across the 2 TensorCores when B is small).
    k = jnp.einsum("blc,cd->bld", y_b, wk.astype(bf16),
                   preferred_element_type=f32) + bk.astype(f32)   # (B,Lkv,D)
    v = jnp.einsum("blc,cd->bld", y_b, wv.astype(bf16),
                   preferred_element_type=f32) + bv.astype(f32)
    kt_b = jnp.swapaxes(k.astype(bf16), 1, 2)                     # (B,D,Lkv)
    v_b = v.astype(bf16)                                          # (B,Lkv,D)

    kernel = functools.partial(_cross_attention_kernel,
                               n_heads=n_heads, d_head=d_head, lkv_valid=Lkv)

    def const(shape):
        return pl.BlockSpec(shape, lambda b, t: (0,) * len(shape))

    # ---- explicit VMEM budget (double-buffered blocks + scratch + slack) ---
    vmem_bytes = (
        2 * (TQ * D * 2)                     # x tile
        + 2 * (D * Lkv_pad * 2)              # K^T
        + 2 * (Lkv_pad * D * 2)              # V
        + 2 * (2 * D * D * 2 + 2 * D * 4)    # wq/wo + biases
        + 2 * (TQ * D * 4)                   # out tile
        + TQ * D * 4                         # ctx scratch
        + 2 * TQ * Lkv_pad * 4               # in-flight scores/probs headroom
    )
    vmem_limit = int(min(96 * 2 ** 20, max(32 * 2 ** 20, 2 * vmem_bytes)))

    # Advisory cost (K/V projection is no longer part of this kernel).
    flops = (2 * B * Lq_pad * D * D             # q proj
             + 2 * B * Lq_pad * D * D           # out proj
             + 4 * B * Lq_pad * Lkv_pad * D)    # scores + probs @ V
    cost = pl.CostEstimate(
        flops=int(flops),
        transcendentals=int(B * n_heads * Lq_pad * Lkv_pad),
        bytes_accessed=int(
            x_b.size * 2 + kt_b.size * 2 + v_b.size * 2
            + (wq_b.size + wo_b.size) * 2 + (bq2.size + bo2.size) * 4
            + B * Lq_pad * D * 4),
    )

    out = pl.pallas_call(
        kernel,
        out_shape=jax.ShapeDtypeStruct((B, Lq_pad, D), orig_dtype),
        grid_spec=pltpu.PrefetchScalarGridSpec(
            num_scalar_prefetch=0,
            grid=(B, n_q_tiles),
            in_specs=[
                pl.BlockSpec((1, TQ, D), lambda b, t: (b, t, 0)),       # x tile
                pl.BlockSpec((1, D, Lkv_pad), lambda b, t: (b, 0, 0)),  # K^T
                pl.BlockSpec((1, Lkv_pad, D), lambda b, t: (b, 0, 0)),  # V
                const((D, D)),    # wq (scaled)
                const((1, D)),    # bq (scaled)
                const((D, D)),    # wo
                const((1, D)),    # bo
            ],
            out_specs=pl.BlockSpec((1, TQ, D), lambda b, t: (b, t, 0)),
            scratch_shapes=[pltpu.VMEM((TQ, D), jnp.float32)],
        ),
        compiler_params=pltpu.CompilerParams(
            dimension_semantics=("parallel", "parallel"),
            vmem_limit_bytes=vmem_limit),
        cost_estimate=cost,
    )(x_b, kt_b, v_b, wq_b, bq2, wo_b, bo2)

    if Lq_pad != Lq:
        out = out[:, :Lq, :]
    return out


def reference_cross_attention(x, y, params, n_heads: int):
    """Pure-JAX f32 reference matching the PyTorch forward semantics."""
    wq, bq, wk, bk, wv, bv, wo, bo = params
    B, Lq, D = x.shape
    Lkv = y.shape[1]
    d_head = D // n_heads
    q = x @ wq + bq
    k = y @ wk + bk
    v = y @ wv + bv
    q = q.reshape(B, Lq, n_heads, d_head).transpose(0, 2, 1, 3)
    k = k.reshape(B, Lkv, n_heads, d_head).transpose(0, 2, 1, 3)
    v = v.reshape(B, Lkv, n_heads, d_head).transpose(0, 2, 1, 3)
    w = (q @ jnp.swapaxes(k, -1, -2)) / math.sqrt(d_head)
    w = jax.nn.softmax(w, axis=-1)
    o = (w @ v).transpose(0, 2, 1, 3).reshape(B, Lq, D)
    return o @ wo + bo


def init_params(key, d_embed, d_cross):
    ks = jax.random.split(key, 8)

    def lin(kw, kb, d_in, d_out):
        bound = 1.0 / math.sqrt(d_in)
        w = jax.random.uniform(kw, (d_in, d_out), jnp.float32, -bound, bound)
        b = jax.random.uniform(kb, (d_out,), jnp.float32, -bound, bound)
        return w, b

    wq, bq = lin(ks[0], ks[1], d_embed, d_embed)
    wk, bk = lin(ks[2], ks[3], d_cross, d_embed)
    wv, bv = lin(ks[4], ks[5], d_cross, d_embed)
    wo, bo = lin(ks[6], ks[7], d_embed, d_embed)
    return (wq, bq, wk, bk, wv, bv, wo, bo)


if __name__ == "__main__":
    # Small shapes consistent with the module's forward:
    # x: (batch, seq_q, d_embed), y: (batch, seq_kv, d_cross)
    B, Lq, Lkv = 2, 16, 8
    n_heads, d_embed, d_cross = 4, 32, 16

    key = jax.random.PRNGKey(0)
    kx, ky, kp = jax.random.split(key, 3)
    x = jax.random.normal(kx, (B, Lq, d_embed), jnp.float32)
    y = jax.random.normal(ky, (B, Lkv, d_cross), jnp.float32)
    params = init_params(kp, d_embed, d_cross)

    out = cross_attention(x, y, params, n_heads)
    out = jax.block_until_ready(out)

    ref = reference_cross_attention(x, y, params, n_heads)
    assert out.shape == (B, Lq, d_embed)
    # bf16 MXU operands (activations + weights) + approx EUP reciprocal.
    assert jnp.allclose(out, ref, atol=3e-2, rtol=3e-2)

    print("KERNEL_OK")
</pallas_src>

<mosaic_0001>
module attributes {stable_mosaic.version = 11 : i64} {
  func.func @_cross_attention_kernel(%arg0: i32, %arg1: i32, %arg2: memref<1x16x32xbf16, #tpu.memory_space<vmem>>, %arg3: memref<1x32x128xbf16, #tpu.memory_space<vmem>>, %arg4: memref<1x128x32xbf16, #tpu.memory_space<vmem>>, %arg5: memref<32x32xbf16, #tpu.memory_space<vmem>>, %arg6: memref<1x32xf32, #tpu.memory_space<vmem>>, %arg7: memref<32x32xbf16, #tpu.memory_space<vmem>>, %arg8: memref<1x32xf32, #tpu.memory_space<vmem>>, %arg9: memref<1x16x32xf32, #tpu.memory_space<vmem>>, %arg10: memref<16x32xf32, #tpu.memory_space<vmem>>) attributes {dimension_semantics = [#tpu.dimension_semantics<parallel>, #tpu.dimension_semantics<parallel>], iteration_bounds = array<i64: 2, 1>, scalar_prefetch = 0 : i64, scratch_operands = 1 : i64, tpu.core_type = #tpu.core_type<tc>, window_params = [{transform_indices = @transform_0, window_bounds = array<i64: 1, 16, 32>}, {transform_indices = @transform_1, window_bounds = array<i64: 1, 32, 128>}, {transform_indices = @transform_2, window_bounds = array<i64: 1, 128, 32>}, {pipeline_mode = #tpu.pipeline_mode<synchronous>, transform_indices = @transform_3, window_bounds = array<i64: 32, 32>}, {pipeline_mode = #tpu.pipeline_mode<synchronous>, transform_indices = @transform_4, window_bounds = array<i64: 1, 32>}, {pipeline_mode = #tpu.pipeline_mode<synchronous>, transform_indices = @transform_5, window_bounds = array<i64: 32, 32>}, {pipeline_mode = #tpu.pipeline_mode<synchronous>, transform_indices = @transform_6, window_bounds = array<i64: 1, 32>}, {transform_indices = @transform_7, window_bounds = array<i64: 1, 16, 32>}]} {
    %c0 = arith.constant 0 : index
    %c0_0 = arith.constant 0 : index
    %c0_1 = arith.constant 0 : index
    %0 = vector.load %arg2[%c0, %c0_0, %c0_1] : memref<1x16x32xbf16, #tpu.memory_space<vmem>>, vector<1x16x32xbf16>
    %1 = vector.shape_cast %0 : vector<1x16x32xbf16> to vector<16x32xbf16>
    %c0_2 = arith.constant 0 : index
    %c0_3 = arith.constant 0 : index
    %2 = vector.load %arg5[%c0_2, %c0_3] : memref<32x32xbf16, #tpu.memory_space<vmem>>, vector<32x32xbf16>
    %cst = arith.constant dense<0.000000e+00> : vector<16x32xf32>
    %3 = tpu.matmul %1, %2, %cst {dimension_numbers = #tpu.dot_dimension_numbers<[1], [0], [0], [1], [0, 0, 1, 1], [], []>} : vector<16x32xbf16>, vector<32x32xbf16>, vector<16x32xf32> -> vector<16x32xf32>
    %c0_4 = arith.constant 0 : index
    %c0_5 = arith.constant 0 : index
    %4 = vector.load %arg6[%c0_4, %c0_5] : memref<1x32xf32, #tpu.memory_space<vmem>>, vector<1x32xf32>
    %5 = vector.broadcast %4 : vector<1x32xf32> to vector<16x32xf32>
    %6 = arith.addf %3, %5 : vector<16x32xf32>
    %7 = arith.truncf %6 : vector<16x32xf32> to vector<16x32xbf16>
    %8 = tpu.iota {dimensions = array<i32: 1>} : vector<1x128xi32>
    %c8_i32 = arith.constant 8 : i32
    %9 = vector.broadcast %c8_i32 : i32 to vector<1x128xi32>
    %10 = arith.cmpi slt, %8, %9 : vector<1x128xi32>
    %cst_6 = arith.constant 0.000000e+00 : f32
    %cst_7 = arith.constant -1.000000e+30 : f32
    %11 = vector.broadcast %cst_6 : f32 to vector<1x128xf32>
    %12 = vector.broadcast %cst_7 : f32 to vector<1x128xf32>
    %13 = arith.select %10, %11, %12 : vector<1x128xi1>, vector<1x128xf32>
    %14 = vector.extract_strided_slice %7 {offsets = [0, 0], sizes = [16, 8], strides = [1, 1]} : vector<16x32xbf16> to vector<16x8xbf16>
    %c0_8 = arith.constant 0 : index
    %c0_9 = arith.constant 0 : index
    %c0_10 = arith.constant 0 : index
    %15 = vector.load %arg3[%c0_8, %c0_9, %c0_10] : memref<1x32x128xbf16, #tpu.memory_space<vmem>>, vector<1x8x128xbf16>
    %16 = vector.shape_cast %15 : vector<1x8x128xbf16> to vector<8x128xbf16>
    %c0_11 = arith.constant 0 : index
    %c0_12 = arith.constant 0 : index
    %c0_13 = arith.constant 0 : index
    %17 = vector.load %arg4[%c0_11, %c0_12, %c0_13] : memref<1x128x32xbf16, #tpu.memory_space<vmem>>, vector<1x128x8xbf16>
    %18 = vector.shape_cast %17 : vector<1x128x8xbf16> to vector<128x8xbf16>
    %cst_14 = arith.constant dense<0.000000e+00> : vector<16x128xf32>
    %19 = tpu.matmul %14, %16, %cst_14 {dimension_numbers = #tpu.dot_dimension_numbers<[1], [0], [0], [1], [0, 0, 1, 1], [], []>} : vector<16x8xbf16>, vector<8x128xbf16>, vector<16x128xf32> -> vector<16x128xf32>
    %20 = vector.broadcast %13 : vector<1x128xf32> to vector<16x128xf32>
    %21 = arith.addf %19, %20 : vector<16x128xf32>
    %cst_15 = arith.constant dense<0xFF800000> : vector<16xf32>
    %22 = vector.multi_reduction <maximumf>, %21, %cst_15 [1] : vector<16x128xf32> to vector<16xf32>
    %23 = vector.shape_cast %22 : vector<16xf32> to vector<16x1xf32>
    %24 = vector.broadcast %23 : vector<16x1xf32> to vector<16x128xf32>
    %25 = arith.subf %21, %24 : vector<16x128xf32>
    %26 = math.exp %25 : vector<16x128xf32>
    %cst_16 = arith.constant dense<0.000000e+00> : vector<16xf32>
    %27 = vector.multi_reduction <add>, %26, %cst_16 [1] : vector<16x128xf32> to vector<16xf32>
    %28 = vector.shape_cast %27 : vector<16xf32> to vector<16x1xf32>
    %29 = tpu.reciprocal %28 {approx = true} : vector<16x1xf32> -> vector<16x1xf32>
    %30 = vector.broadcast %29 : vector<16x1xf32> to vector<16x128xf32>
    %31 = arith.mulf %26, %30 : vector<16x128xf32>
    %32 = arith.truncf %31 : vector<16x128xf32> to vector<16x128xbf16>
    %cst_17 = arith.constant dense<0.000000e+00> : vector<16x8xf32>
    %33 = tpu.matmul %32, %18, %cst_17 {dimension_numbers = #tpu.dot_dimension_numbers<[1], [0], [0], [1], [0, 0, 1, 1], [], []>} : vector<16x128xbf16>, vector<128x8xbf16>, vector<16x8xf32> -> vector<16x8xf32>
    %c0_18 = arith.constant 0 : index
    %c0_19 = arith.constant 0 : index
    %34 = vector.load %arg10[%c0_18, %c0_19] : memref<16x32xf32, #tpu.memory_space<vmem>>, vector<16x8xf32>
    tpu.vector_store %arg10[%c0_18, %c0_19], %33 {strides = array<i32>} : memref<16x32xf32, #tpu.memory_space<vmem>>, vector<16x8xf32>,
    %35 = vector.extract_strided_slice %7 {offsets = [0, 8], sizes = [16, 8], strides = [1, 1]} : vector<16x32xbf16> to vector<16x8xbf16>
    %c0_20 = arith.constant 0 : index
    %c8 = arith.constant 8 : index
    %c0_21 = arith.constant 0 : index
    %36 = vector.load %arg3[%c0_20, %c8, %c0_21] : memref<1x32x128xbf16, #tpu.memory_space<vmem>>, vector<1x8x128xbf16>
    %37 = vector.shape_cast %36 : vector<1x8x128xbf16> to vector<8x128xbf16>
    %c0_22 = arith.constant 0 : index
    %c0_23 = arith.constant 0 : index
    %c8_24 = arith.constant 8 : index
    %38 = vector.load %arg4[%c0_22, %c0_23, %c8_24] : memref<1x128x32xbf16, #tpu.memory_space<vmem>>, vector<1x128x8xbf16>
    %39 = vector.shape_cast %38 : vector<1x128x8xbf16> to vector<128x8xbf16>
    %cst_25 = arith.constant dense<0.000000e+00> : vector<16x128xf32>
    %40 = tpu.matmul %35, %37, %cst_25 {dimension_numbers = #tpu.dot_dimension_numbers<[1], [0], [0], [1], [0, 0, 1, 1], [], []>} : vector<16x8xbf16>, vector<8x128xbf16>, vector<16x128xf32> -> vector<16x128xf32>
    %41 = vector.broadcast %13 : vector<1x128xf32> to vector<16x128xf32>
    %42 = arith.addf %40, %41 : vector<16x128xf32>
    %cst_26 = arith.constant dense<0xFF800000> : vector<16xf32>
    %43 = vector.multi_reduction <maximumf>, %42, %cst_26 [1] : vector<16x128xf32> to vector<16xf32>
    %44 = vector.shape_cast %43 : vector<16xf32> to vector<16x1xf32>
    %45 = vector.broadcast %44 : vector<16x1xf32> to vector<16x128xf32>
    %46 = arith.subf %42, %45 : vector<16x128xf32>
    %47 = math.exp %46 : vector<16x128xf32>
    %cst_27 = arith.constant dense<0.000000e+00> : vector<16xf32>
    %48 = vector.multi_reduction <add>, %47, %cst_27 [1] : vector<16x128xf32> to vector<16xf32>
    %49 = vector.shape_cast %48 : vector<16xf32> to vector<16x1xf32>
    %50 = tpu.reciprocal %49 {approx = true} : vector<16x1xf32> -> vector<16x1xf32>
    %51 = vector.broadcast %50 : vector<16x1xf32> to vector<16x128xf32>
    %52 = arith.mulf %47, %51 : vector<16x128xf32>
    %53 = arith.truncf %52 : vector<16x128xf32> to vector<16x128xbf16>
    %cst_28 = arith.constant dense<0.000000e+00> : vector<16x8xf32>
    %54 = tpu.matmul %53, %39, %cst_28 {dimension_numbers = #tpu.dot_dimension_numbers<[1], [0], [0], [1], [0, 0, 1, 1], [], []>} : vector<16x128xbf16>, vector<128x8xbf16>, vector<16x8xf32> -> vector<16x8xf32>
    %c0_29 = arith.constant 0 : index
    %c8_30 = arith.constant 8 : index
    %55 = vector.load %arg10[%c0_29, %c8_30] : memref<16x32xf32, #tpu.memory_space<vmem>>, vector<16x8xf32>
    tpu.vector_store %arg10[%c0_29, %c8_30], %54 {strides = array<i32>} : memref<16x32xf32, #tpu.memory_space<vmem>>, vector<16x8xf32>,
    %56 = vector.extract_strided_slice %7 {offsets = [0, 16], sizes = [16, 8], strides = [1, 1]} : vector<16x32xbf16> to vector<16x8xbf16>
    %c0_31 = arith.constant 0 : index
    %c16 = arith.constant 16 : index
    %c0_32 = arith.constant 0 : index
    %57 = vector.load %arg3[%c0_31, %c16, %c0_32] : memref<1x32x128xbf16, #tpu.memory_space<vmem>>, vector<1x8x128xbf16>
    %58 = vector.shape_cast %57 : vector<1x8x128xbf16> to vector<8x128xbf16>
    %c0_33 = arith.constant 0 : index
    %c0_34 = arith.constant 0 : index
    %c16_35 = arith.constant 16 : index
    %59 = vector.load %arg4[%c0_33, %c0_34, %c16_35] : memref<1x128x32xbf16, #tpu.memory_space<vmem>>, vector<1x128x8xbf16>
    %60 = vector.shape_cast %59 : vector<1x128x8xbf16> to vector<128x8xbf16>
    %cst_36 = arith.constant dense<0.000000e+00> : vector<16x128xf32>
    %61 = tpu.matmul %56, %58, %cst_36 {dimension_numbers = #tpu.dot_dimension_numbers<[1], [0], [0], [1], [0, 0, 1, 1], [], []>} : vector<16x8xbf16>, vector<8x128xbf16>, vector<16x128xf32> -> vector<16x128xf32>
    %62 = vector.broadcast %13 : vector<1x128xf32> to vector<16x128xf32>
    %63 = arith.addf %61, %62 : vector<16x128xf32>
    %cst_37 = arith.constant dense<0xFF800000> : vector<16xf32>
    %64 = vector.multi_reduction <maximumf>, %63, %cst_37 [1] : vector<16x128xf32> to vector<16xf32>
    %65 = vector.shape_cast %64 : vector<16xf32> to vector<16x1xf32>
    %66 = vector.broadcast %65 : vector<16x1xf32> to vector<16x128xf32>
    %67 = arith.subf %63, %66 : vector<16x128xf32>
    %68 = math.exp %67 : vector<16x128xf32>
    %cst_38 = arith.constant dense<0.000000e+00> : vector<16xf32>
    %69 = vector.multi_reduction <add>, %68, %cst_38 [1] : vector<16x128xf32> to vector<16xf32>
    %70 = vector.shape_cast %69 : vector<16xf32> to vector<16x1xf32>
    %71 = tpu.reciprocal %70 {approx = true} : vector<16x1xf32> -> vector<16x1xf32>
    %72 = vector.broadcast %71 : vector<16x1xf32> to vector<16x128xf32>
    %73 = arith.mulf %68, %72 : vector<16x128xf32>
    %74 = arith.truncf %73 : vector<16x128xf32> to vector<16x128xbf16>
    %cst_39 = arith.constant dense<0.000000e+00> : vector<16x8xf32>
    %75 = tpu.matmul %74, %60, %cst_39 {dimension_numbers = #tpu.dot_dimension_numbers<[1], [0], [0], [1], [0, 0, 1, 1], [], []>} : vector<16x128xbf16>, vector<128x8xbf16>, vector<16x8xf32> -> vector<16x8xf32>
    %c0_40 = arith.constant 0 : index
    %c16_41 = arith.constant 16 : index
    %76 = vector.load %arg10[%c0_40, %c16_41] : memref<16x32xf32, #tpu.memory_space<vmem>>, vector<16x8xf32>
    tpu.vector_store %arg10[%c0_40, %c16_41], %75 {strides = array<i32>} : memref<16x32xf32, #tpu.memory_space<vmem>>, vector<16x8xf32>,
    %77 = vector.extract_strided_slice %7 {offsets = [0, 24], sizes = [16, 8], strides = [1, 1]} : vector<16x32xbf16> to vector<16x8xbf16>
    %c0_42 = arith.constant 0 : index
    %c24 = arith.constant 24 : index
    %c0_43 = arith.constant 0 : index
    %78 = vector.load %arg3[%c0_42, %c24, %c0_43] : memref<1x32x128xbf16, #tpu.memory_space<vmem>>, vector<1x8x128xbf16>
    %79 = vector.shape_cast %78 : vector<1x8x128xbf16> to vector<8x128xbf16>
    %c0_44 = arith.constant 0 : index
    %c0_45 = arith.constant 0 : index
    %c24_46 = arith.constant 24 : index
    %80 = vector.load %arg4[%c0_44, %c0_45, %c24_46] : memref<1x128x32xbf16, #tpu.memory_space<vmem>>, vector<1x128x8xbf16>
    %81 = vector.shape_cast %80 : vector<1x128x8xbf16> to vector<128x8xbf16>
    %cst_47 = arith.constant dense<0.000000e+00> : vector<16x128xf32>
    %82 = tpu.matmul %77, %79, %cst_47 {dimension_numbers = #tpu.dot_dimension_numbers<[1], [0], [0], [1], [0, 0, 1, 1], [], []>} : vector<16x8xbf16>, vector<8x128xbf16>, vector<16x128xf32> -> vector<16x128xf32>
    %83 = vector.broadcast %13 : vector<1x128xf32> to vector<16x128xf32>
    %84 = arith.addf %82, %83 : vector<16x128xf32>
    %cst_48 = arith.constant dense<0xFF800000> : vector<16xf32>
    %85 = vector.multi_reduction <maximumf>, %84, %cst_48 [1] : vector<16x128xf32> to vector<16xf32>
    %86 = vector.shape_cast %85 : vector<16xf32> to vector<16x1xf32>
    %87 = vector.broadcast %86 : vector<16x1xf32> to vector<16x128xf32>
    %88 = arith.subf %84, %87 : vector<16x128xf32>
    %89 = math.exp %88 : vector<16x128xf32>
    %cst_49 = arith.constant dense<0.000000e+00> : vector<16xf32>
    %90 = vector.multi_reduction <add>, %89, %cst_49 [1] : vector<16x128xf32> to vector<16xf32>
    %91 = vector.shape_cast %90 : vector<16xf32> to vector<16x1xf32>
    %92 = tpu.reciprocal %91 {approx = true} : vector<16x1xf32> -> vector<16x1xf32>
    %93 = vector.broadcast %92 : vector<16x1xf32> to vector<16x128xf32>
    %94 = arith.mulf %89, %93 : vector<16x128xf32>
    %95 = arith.truncf %94 : vector<16x128xf32> to vector<16x128xbf16>
    %cst_50 = arith.constant dense<0.000000e+00> : vector<16x8xf32>
    %96 = tpu.matmul %95, %81, %cst_50 {dimension_numbers = #tpu.dot_dimension_numbers<[1], [0], [0], [1], [0, 0, 1, 1], [], []>} : vector<16x128xbf16>, vector<128x8xbf16>, vector<16x8xf32> -> vector<16x8xf32>
    %c0_51 = arith.constant 0 : index
    %c24_52 = arith.constant 24 : index
    %97 = vector.load %arg10[%c0_51, %c24_52] : memref<16x32xf32, #tpu.memory_space<vmem>>, vector<16x8xf32>
    tpu.vector_store %arg10[%c0_51, %c24_52], %96 {strides = array<i32>} : memref<16x32xf32, #tpu.memory_space<vmem>>, vector<16x8xf32>,
    %c0_53 = arith.constant 0 : index
    %c0_54 = arith.constant 0 : index
    %98 = vector.load %arg10[%c0_53, %c0_54] : memref<16x32xf32, #tpu.memory_space<vmem>>, vector<16x32xf32>
    %99 = arith.truncf %98 : vector<16x32xf32> to vector<16x32xbf16>
    %c0_55 = arith.constant 0 : index
    %c0_56 = arith.constant 0 : index
    %100 = vector.load %arg7[%c0_55, %c0_56] : memref<32x32xbf16, #tpu.memory_space<vmem>>, vector<32x32xbf16>
    %cst_57 = arith.constant dense<0.000000e+00> : vector<16x32xf32>
    %101 = tpu.matmul %99, %100, %cst_57 {dimension_numbers = #tpu.dot_dimension_numbers<[1], [0], [0], [1], [0, 0, 1, 1], [], []>} : vector<16x32xbf16>, vector<32x32xbf16>, vector<16x32xf32> -> vector<16x32xf32>
    %c0_58 = arith.constant 0 : index
    %c0_59 = arith.constant 0 : index
    %102 = vector.load %arg8[%c0_58, %c0_59] : memref<1x32xf32, #tpu.memory_space<vmem>>, vector<1x32xf32>
    %103 = vector.broadcast %102 : vector<1x32xf32> to vector<16x32xf32>
    %104 = arith.addf %101, %103 : vector<16x32xf32>
    %c0_60 = arith.constant 0 : index
    %c0_61 = arith.constant 0 : index
    %c0_62 = arith.constant 0 : index
    %105 = vector.load %arg9[%c0_60, %c0_61, %c0_62] : memref<1x16x32xf32, #tpu.memory_space<vmem>>, vector<1x16x32xf32>
    %106 = vector.shape_cast %105 : vector<1x16x32xf32> to vector<16x32xf32>
    %107 = vector.shape_cast %104 : vector<16x32xf32> to vector<1x16x32xf32>
    tpu.vector_store %arg9[%c0_60, %c0_61, %c0_62], %107 {strides = array<i32>} : memref<1x16x32xf32, #tpu.memory_space<vmem>>, vector<1x16x32xf32>,
    return
  }
  func.func @transform_0(%arg0: i32, %arg1: i32) -> (i32, i32, i32) {
    %c0_i32 = arith.constant 0 : i32
    %c0_i32_0 = arith.constant 0 : i32
    return %arg0, %arg1, %c0_i32 : i32, i32, i32
  }
  func.func @transform_1(%arg0: i32, %arg1: i32) -> (i32, i32, i32) {
    %c0_i32 = arith.constant 0 : i32
    %c0_i32_0 = arith.constant 0 : i32
    %c0_i32_1 = arith.constant 0 : i32
    return %arg0, %c0_i32, %c0_i32_0 : i32, i32, i32
  }
  func.func @transform_2(%arg0: i32, %arg1: i32) -> (i32, i32, i32) {
    %c0_i32 = arith.constant 0 : i32
    %c0_i32_0 = arith.constant 0 : i32
    %c0_i32_1 = arith.constant 0 : i32
    return %arg0, %c0_i32, %c0_i32_0 : i32, i32, i32
  }
  func.func @transform_3(%arg0: i32, %arg1: i32) -> (i32, i32) {
    %c0_i32 = arith.constant 0 : i32
    %c0_i32_0 = arith.constant 0 : i32
    %c0_i32_1 = arith.constant 0 : i32
    return %c0_i32, %c0_i32_0 : i32, i32
  }
  func.func @transform_4(%arg0: i32, %arg1: i32) -> (i32, i32) {
    %c0_i32 = arith.constant 0 : i32
    %c0_i32_0 = arith.constant 0 : i32
    %c0_i32_1 = arith.constant 0 : i32
    return %c0_i32, %c0_i32_0 : i32, i32
  }
  func.func @transform_5(%arg0: i32, %arg1: i32) -> (i32, i32) {
    %c0_i32 = arith.constant 0 : i32
    %c0_i32_0 = arith.constant 0 : i32
    %c0_i32_1 = arith.constant 0 : i32
    return %c0_i32, %c0_i32_0 : i32, i32
  }
  func.func @transform_6(%arg0: i32, %arg1: i32) -> (i32, i32) {
    %c0_i32 = arith.constant 0 : i32
    %c0_i32_0 = arith.constant 0 : i32
    %c0_i32_1 = arith.constant 0 : i32
    return %c0_i32, %c0_i32_0 : i32, i32
  }
  func.func @transform_7(%arg0: i32, %arg1: i32) -> (i32, i32, i32) {
    %c0_i32 = arith.constant 0 : i32
    %c0_i32_0 = arith.constant 0 : i32
    return %arg0, %arg1, %c0_i32 : i32, i32, i32
  }
}

</mosaic_0001>

<bundles_post_ra>
// kernel: tpu_custom_call.1
= control target key start
LH: loop header
LB: loop body
LE: loop exit
PB: predicated region body
PF: predicated region fallthrough
CT: control target
= control target key end

     0   :  { %12 = vsyncpa [#allocation4], 0  ;;  %s1791_s0 = inlined_call_operand.vmem [shape: bf16[2,16,32], index: 0, kind: input, shape index: {}]   ;;  %s1792_s1 = inlined_call_operand.vmem [shape: bf16[2,32,128], index: 1, kind: input, shape index: {}]   ;;  %s1793_s2 = inlined_call_operand.vmem [shape: bf16[2,128,32], index: 2, kind: input, shape index: {}]   ;;  %s1794_s3 = inlined_call_operand.vmem [shape: bf16[32,32], index: 3, kind: input, shape index: {}]   ;;  %s1795_s4 = inlined_call_operand.vmem [shape: f32[1,32], index: 4, kind: input, shape index: {}]   ;;  %s1796_s5 = inlined_call_operand.vmem [shape: bf16[32,32], index: 5, kind: input, shape index: {}]   ;;  %s1797_s6 = inlined_call_operand.vmem [shape: f32[1,32], index: 6, kind: input, shape index: {}]   ;;  %s1798_s7 = inlined_call_operand.hbm [shape: f32[2,16,32], index: 7, kind: output, shape index: {}]  }
   0x1   :  { %14 = vsyncpa [#allocation4 + $0x1], 0  ;;  %s1568_s24 = smov 0   ;;  %s1570_s25 = smov 0  }
   0x2   :  { %s1572_s26 = smov 0   ;;  %s1574_s27 = smov 0  }
   0x3   :  { %s1576_s28 = smov 0   ;;  %s1578_s29 = smov 0  }
   0x4 LB: > { %s1131_s30 = sadd.s32 4294967295, %s1518_s29   ;;  %s1132_s8 = sadd.s32 4294967294, %s1518_s29   ;;  %s1518_s29 = sphi %s1578_s29, %s20_s29   ;;  %s1514_s28 = sphi %s1576_s28, %s1805_s28   ;;  %s1510_s27 = sphi %s1574_s27, %s1804_s27   ;;  %s1506_s26 = sphi %s1572_s26, %s1803_s26   ;;  %s1502_s25 = sphi %s1570_s25, %s1802_s25   ;;  %s1498_s24 = sphi %s1568_s24, %s1801_s24  }
   0x5   : > { %s32_s9 = sadd.s32 1, %s1514_s28  ;;  %s205_s10 = sadd.s32 1, %s1506_s26 }
   0x6   : > { %p34_p0 = scmp.ge.s32.totalorder %s32_s9, 2  ;;  %p215_p1 = scmp.ne.s32.totalorder %s1506_s26, %s1502_s25 }
   0x7   : > { %p216_p2 = scmp.eq.s32.totalorder %s1131_s30, 1  ;;  %p221_p3 = scmp.ne.s32.totalorder %s1502_s25, %s1498_s24 }
   0x8   : > { %s1807_s9 = smov (%p34_p0, %s32_s9), 0  ;;  %p222_p5 = scmp.eq.s32.totalorder %s1132_s8, 1 }
   0x9   : > { %p1608_p4 = por %p216_p2, %p215_p1  ;;  %s200_s12 = ssub.s32 %s1514_s28, %s1807_s9 }
   0xa   : > { %p1135_p6 = scmp.ge.s32.totalorder %s1518_s29, 1  ;;  %p203_p7 = scmp.eq.s32.totalorder %s200_s12, 0 }
   0xb   : > { %p1615_p8 = por %p222_p5, %p221_p3  ;;  %p281_p9 = scmp.lt.s32.totalorder %s1518_s29, 3 }
   0xc   : > { %s1621_s14 = scalar_select %p203_p7, %s1506_s26, %s205_s10  }
   0xd   : > { %p282_p10 = pnand %p1135_p6, %p281_p9 }
   0xe   : > { %p328_p11 = scmp.lt.s32.totalorder (!%p282_p10), %s1510_s27, 1  ;;  %s1520_s22 = smov (!%p282_p10), 104  }
   0xf   : > { %285 = sbr.rel (%p282_p10) target bundleno = 1133 (0x46d), region = 48  ;;  %s1525_s8 = smov (!%p282_p10), 24  }
  0x10   : > { %s1526_s10 = smov (!%p282_p10), 16   ;;  %s324_s18 = sand.u32 (!%p282_p10), 1, %s1502_s25  }
  0x14   : > { %v1307_v0 = vld [vmem:[%s1794_s3 + $0x8] sm:$0xff]  ;;  %v1306_v1 = vld [vmem:[%s1794_s3] sm:$0xff]  ;;  %s329_s19 = scalar_select %p328_p11, %s1510_s27, 1  ;;  %vm376_vm0 = vcmask 261120   ;;  %vm426_vm1 = vcmask 1043456   ;;  %vm422_vm2 = vcmask 64512   ;;  %v396_v42 = vlaneseq }
  0x15   : > { %386 = vmatpush.bf16.msra.mxu0 %v1307_v0  ;;  %v1406_v6 = vld [vmem:[%s1795_s4] ss:$0 sm:$0xff]  ;;  %v1523_v54 = vmov -1e+30   ;;  %vm671_vm4 = vcmask 130112   ;;  %vm818_vm5 = vcmask 195712  }
  0x16   : > { %s1302_s20 = sshll.u32 %s329_s19, 3  ;;  %s1303_s30 = sshll.u32 %s329_s19, 4  ;;  %v397_v49 = vand.u32 127, %v396_v42  ;;  %vm965_vm6 = vcmask 261312  }
  0x17   : > { %s335_s23 = scalar_lea.vmem %s1791_s0, %s1302_s20  ;;  %s1638_s12 = scalar_lea.vmem %s1792_s1, %s1303_s30 }
  0x18   : > { %v1305_v2 = vld [vmem:[%s335_s23] sm:$0xff]  ;;  %s1304_s17 = sshll.u32 %s329_s19, 6  ;;  %s1521_s19 = smov 120   ;;  %v674_v35 = vld [vmem:[%s1638_s12 + $0x8] sm:$0xf]  ;;  %vm398_vm3 = vcmp.lt.s32.totalorder %v397_v49, 8 }
  0x19   : > { %387 = vmatpush.bf16.msra.mxu0 %v1306_v1  ;;  %v400_v3 = vld [vmem:[%s1638_s12] sm:$0xf]  ;;  %s1648_s21 = scalar_lea.vmem %s1793_s2, %s1304_s17  ;;  %s1522_s23 = smov 112   ;;  %v527_v25 = vld [vmem:[%s1638_s12 + $0x4] sm:$0xf]  ;;  %v697_v36 = vsel %vm426_vm1, %v674_v35, 0 }
  0x1a   : > { %v428_v4 = vsel %vm426_vm1, %v400_v3, 0  ;;  %v1339_v11 = vld [vmem:[%s1648_s21 + $0x38] sm:$0xff]  ;;  %v1322_v18 = vld [vmem:[%s1648_s21 + $0x30] sm:$0xff]  ;;  %v1337_v20 = vld [vmem:[%s1648_s21 + $0x28] sm:$0xff]  ;;  %v550_v26 = vsel %vm426_vm1, %v527_v25, 0  ;;  %v1705_v55 = vsel %vm398_vm3, 0.0, %v1523_v54 }
  0x1b   : > { %437 = vmatpush.bf16.msra.mxu1 %v428_v4  ;;  %933 = vrot.lane.b32.xlu2 %v1339_v11, %s1520_s22  ;;  %v1331_v16 = vld [vmem:[%s1648_s21 + $0x38] sm:$0xff]  ;;  %v1338_v19 = vld [vmem:[%s1648_s21 + $0x30] sm:$0xff]  ;;  %v1321_v21 = vld [vmem:[%s1648_s21 + $0x28] sm:$0xff]  ;;  %s1524_s30 = smov 8   ;;  %s1136_s20 = sshll.u32 %s324_s18, 4 }
  0x1c   : > { %1155 = vmatmul.msk.bf16.vlgmr.msra.gmra.mxu0 %vm376_vm0, %v1305_v2  ;;  %v1323_v17 = vld [vmem:[%s1648_s21 + $0x38] sm:$0xff]  ;;  %v1330_v22 = vld [vmem:[%s1648_s21 + $0x30] sm:$0xff]  ;;  %v1336_v23 = vld [vmem:[%s1648_s21 + $0x20] sm:$0xff]  ;;  %559 = vmatpush.bf16.msra.mxu3 %v550_v26  ;;  %s1011_s17 = scalar_lea.sflag [#allocation4], %s324_s18 }
  0x1d   : > { %v1320_v24 = vld [vmem:[%s1648_s21 + $0x20] sm:$0xff]  ;;  %v1329_v27 = vld [vmem:[%s1648_s21 + $0x28] sm:$0xff]  ;;  %v1335_v28 = vld [vmem:[%s1648_s21 + $0x18] sm:$0xff] }
  0x1e   : > { %v1333_v29 = vld [vmem:[%s1648_s21 + $0x8] sm:$0xff]  ;;  %v1328_v30 = vld [vmem:[%s1648_s21 + $0x20] sm:$0xff]  ;;  %v1318_v31 = vld [vmem:[%s1648_s21 + $0x10] sm:$0xff] }
  0x1f   : > { %v1319_v32 = vld [vmem:[%s1648_s21 + $0x18] sm:$0xff]  ;;  %v1326_v33 = vld [vmem:[%s1648_s21 + $0x10] sm:$0xff]  ;;  %v1313_v39 = vld [vmem:[%s1648_s21 + $0x28] sm:$0xff] }
  0x20   : > { %v1334_v34 = vld [vmem:[%s1648_s21 + $0x10] sm:$0xff]  ;;  %706 = vmatpush.bf16.msrb.mxu3 %v697_v36  ;;  %v1315_v37 = vld [vmem:[%s1648_s21 + $0x38] sm:$0xff]  ;;  %v821_v40 = vld [vmem:[%s1638_s12 + $0xc] sm:$0xf] }
  0x21   : > { %511 = vmatpush.bf16.msra.mxu2 %v1315_v37  ;;  %v1314_v38 = vld [vmem:[%s1648_s21 + $0x30] sm:$0xff]  ;;  %v1312_v41 = vld [vmem:[%s1648_s21 + $0x20] sm:$0xff]  ;;  %v844_v43 = vsel %vm426_vm1, %v821_v40, 0  ;;  %v1311_v47 = vld [vmem:[%s1648_s21 + $0x18] sm:$0xff] }
  0x22   : > { %v1327_v48 = vld [vmem:[%s1648_s21 + $0x18] sm:$0xff]  ;;  %v1310_v50 = vld [vmem:[%s1648_s21 + $0x10] sm:$0xff]  ;;  %v1309_v56 = vld [vmem:[%s1648_s21 + $0x8] sm:$0xff] }
  0x23   : > { %786 = vrot.lane.b32.xlu2 %v1331_v16, %s1522_s23  ;;  %v1308_v59 = vld [vmem:[%s1648_s21] sm:$0xff] }
  0x24   : > { %v1332_v35 = vld [vmem:[%s1648_s21] sm:$0xff] }
  0x25   : > { %512 = vmatpush.bf16.msra.mxu2 %v1314_v38 }
  0x29   : > { %513 = vmatpush.bf16.msra.mxu2 %v1313_v39 }
  0x2b   : > { %637 = vrot.lane.b32.xlu2 %v1322_v18, %s1521_s19 }
  0x2d   : > { %514 = vmatpush.bf16.msra.mxu2 %v1312_v41 }
  0x31   : > { %515 = vmatpush.bf16.msra.mxu2 %v1311_v47 }
  0x33   : > { %635 = vrot.lane.b32.xlu2 %v1321_v21, %s1521_s19 }
  0x35   : > { %516 = vmatpush.bf16.msra.mxu2 %v1310_v50 }
  0x39   : > { %517 = vmatpush.bf16.msra.mxu2 %v1309_v56 }
  0x3b   : > { %633 = vrot.lane.b32.xlu2 %v1320_v24, %s1521_s19 }
  0x3d   : > { %518 = vmatpush.bf16.msra.mxu2 %v1308_v59 }
  0x43   : > { %921 = vrot.lane.b32.xlu2 %v1333_v29, %s1520_s22 }
  0x75   : > { %v934_v46 = vpop.permute.xlu2 %933 }
  0x76   : > { %943 = vmatpush.bf16.msrb.mxu2 %v934_v46 }
  0x7d   : > { %v787_v53 = vpop.permute.xlu2 %786 }
  0x7e   : > { %796 = vmatpush.bf16.msrb.mxu0 %v787_v53 }
  0x85   : > { %v638_v62 = vpop.permute.xlu2 %637 }
  0x8d   : > { %v636_v3 = vpop.permute.xlu2 %635 }
  0x99   : > { %v389_v5 = vpop.f32.mrf.mxu0 }
  0x9a   : > { %v390_v7 = vadd.f32 %v1406_v6, %v389_v5 }
  0x9c   : > { %v394_v9 = vpack.c.bf16 %v390_v7, %v390_v7 }
  0x9e   : > { %v419_v13 = vunpack.c.l.b16 %v394_v9 }
  0xa1   : > { %v391_v8 = vpop.f32.mrf.mxu0 }
  0xa2   : > { %v392_v10 = vadd.f32 %v1406_v6, %v391_v8  ;;  %v634_v6 = vpop.permute.xlu2 %633 }
  0xa4   : > { %v395_v12 = vpack.c.bf16 %v392_v10, %v392_v10 }
  0xa6   : > { %v420_v14 = vunpack.c.l.b16 %v395_v12 }
  0xa8   : > { %v421_v15 = vpack.c.b16 %v420_v14, %v419_v13 }
  0xaa   : > { %838 = vrot.lane.b32.xlu1 %v421_v15, %s1520_s22  ;;  %544 = vrot.lane.b32.xlu0 %v421_v15, %s1521_s19  ;;  %v922_v11 = vpop.permute.xlu2 %921 }
  0xab   : > { %1156 = vmatmul.msk.bf16.vlgmr.msra.gmra.mxu1 %vm422_vm2, %v421_v15 }
  0xb2   : > { %691 = vrot.lane.b32.xlu0 %v421_v15, %s1522_s23  ;;  %639 = vrot.lane.b32.xlu1 %v1323_v17, %s1521_s19 }
  0xba   : > { %931 = vrot.lane.b32.xlu0 %v1338_v19, %s1520_s22  ;;  %929 = vrot.lane.b32.xlu1 %v1337_v20, %s1520_s22 }
  0xc2   : > { %784 = vrot.lane.b32.xlu0 %v1330_v22, %s1522_s23  ;;  %927 = vrot.lane.b32.xlu1 %v1336_v23, %s1520_s22 }
  0xca   : > { %782 = vrot.lane.b32.xlu0 %v1329_v27, %s1522_s23  ;;  %925 = vrot.lane.b32.xlu1 %v1335_v28, %s1520_s22 }
  0xd2   : > { %780 = vrot.lane.b32.xlu0 %v1328_v30, %s1522_s23  ;;  %629 = vrot.lane.b32.xlu1 %v1318_v31, %s1521_s19 }
  0xda   : > { %631 = vrot.lane.b32.xlu0 %v1319_v32, %s1521_s19  ;;  %776 = vrot.lane.b32.xlu1 %v1326_v33, %s1522_s23 }
  0xe2   : > { %923 = vrot.lane.b32.xlu0 %v1334_v34, %s1520_s22  ;;  %v1317_v34 = vld [vmem:[%s1648_s21 + $0x8] sm:$0xff] }
  0xea   : > { %778 = vrot.lane.b32.xlu0 %v1327_v48, %s1522_s23 }
 0x11c   : > { %v839_v44 = vpop.permute.xlu1 %838  ;;  %v545_v45 = vpop.permute.xlu0 %544 }
 0x11d   : > { %1189 = vmatmul.msk.bf16.vlgmr.msra.gmra.mxu3 %vm422_vm2, %v545_v45 }
 0x11e   : > { %853 = vmatpush.bf16.msra.mxu3 %v844_v43 }
 0x124   : > { %v692_v51 = vpop.permute.xlu0 %691  ;;  %v640_v52 = vpop.permute.xlu1 %639 }
 0x125   : > { %649 = vmatpush.bf16.msrb.mxu1 %v640_v52 }
 0x128   : > { %v439_v57 = vpop.f32.mrf.mxu1 }
 0x129   : > { %v440_v58 = vadd.f32 %v439_v57, %v1705_v55  ;;  %650 = vmatpush.bf16.msrb.mxu1 %v638_v62 }
 0x12b   : > { %444 = vmax.xlane.f32.xlu1 %v440_v58 }
 0x12c   : > { %v932_v60 = vpop.permute.xlu0 %931  ;;  %v930_v61 = vpop.permute.xlu1 %929 }
 0x12d   : > { %1222 = vmatmul.msk.bf16.vlgmr.msrb.gmra.mxu3 %vm422_vm2, %v692_v51  ;;  %944 = vmatpush.bf16.msrb.mxu2 %v932_v60 }
 0x12e   : > { %651 = vmatpush.bf16.msrb.mxu1 %v636_v3 }
 0x130   : > { %v441_v63 = vpop.f32.mrf.mxu1 }
 0x131   : > { %v442_v0 = vadd.f32 %v441_v63, %v1705_v55  ;;  %945 = vmatpush.bf16.msrb.mxu2 %v930_v61 }
 0x132   : > { %652 = vmatpush.bf16.msrb.mxu1 %v634_v6  ;;  %v1325_v6 = vld [vmem:[%s1648_s21 + $0x8] sm:$0xff] }
 0x133   : > { %446 = vmax.xlane.f32.xlu2 %v442_v0 }
 0x134   : > { %v785_v1 = vpop.permute.xlu0 %784  ;;  %v928_v2 = vpop.permute.xlu1 %927 }
 0x135   : > { %797 = vmatpush.bf16.msrb.mxu0 %v785_v1  ;;  %946 = vmatpush.bf16.msrb.mxu2 %v928_v2  ;;  %v1324_v2 = vld [vmem:[%s1648_s21] sm:$0xff] }
 0x13c   : > { %v783_v4 = vpop.permute.xlu0 %782  ;;  %v926_v5 = vpop.permute.xlu1 %925 }
 0x13d   : > { %1255 = vmatmul.msk.bf16.vlgmr.msra.gmra.mxu3 %vm422_vm2, %v839_v44  ;;  %798 = vmatpush.bf16.msrb.mxu0 %v783_v4 }
 0x13e   : > { %947 = vmatpush.bf16.msrb.mxu2 %v926_v5  ;;  %v1316_v5 = vld [vmem:[%s1648_s21] sm:$0xff] }
 0x144   : > { %v781_v7 = vpop.permute.xlu0 %780  ;;  %v630_v9 = vpop.permute.xlu1 %629 }
 0x145   : > { %799 = vmatpush.bf16.msrb.mxu0 %v781_v7 }
 0x14c   : > { %v632_v8 = vpop.permute.xlu0 %631  ;;  %v777_v12 = vpop.permute.xlu1 %776 }
 0x14d   : > { %653 = vmatpush.bf16.msrb.mxu1 %v632_v8 }
 0x151   : > { %654 = vmatpush.bf16.msrb.mxu1 %v630_v9 }
 0x154   : > { %v924_v10 = vpop.permute.xlu0 %923 }
 0x155   : > { %948 = vmatpush.bf16.msrb.mxu2 %v924_v10 }
 0x159   : > { %949 = vmatpush.bf16.msrb.mxu2 %v922_v11 }
 0x15c   : > { %v779_v24 = vpop.permute.xlu0 %778 }
 0x15d   : > { %800 = vmatpush.bf16.msrb.mxu0 %v779_v24 }
 0x161   : > { %801 = vmatpush.bf16.msrb.mxu0 %v777_v12 }
 0x19e   : > { %v445_v13 = vpop.xlane.xlu1 %444 }
 0x19f   : > { %v448_v14 = vsub.f32 %v440_v58, %v445_v13 }
 0x1a0   : > { %v561_v15 = vpop.f32.mrf.mxu3 }
 0x1a1   : > { %v450_v16 = vmul.f32 1.442695, %v448_v14  ;;  %v562_v17 = vadd.f32 %v561_v15, %v1705_v55 }
 0x1a3   : > { %1408 = vpow2.f32 %v450_v16  ;;  %566 = vmax.xlane.f32.xlu2 %v562_v17 }
 0x1a6   : > { %v447_v18 = vpop.xlane.xlu2 %446 }
 0x1a7   : > { %v449_v19 = vsub.f32 %v442_v0, %v447_v18 }
 0x1a8   : > { %v563_v20 = vpop.f32.mrf.mxu3 }
 0x1a9   : > { %v1409_v21 = vpop.eup %1408  ;;  %v452_v22 = vmul.f32 1.442695, %v449_v19  ;;  %v564_v23 = vadd.f32 %v563_v20, %v1705_v55 }
 0x1aa   : > { %454 = vadd.xlane.f32.xlu1 %v1409_v21 }
 0x1ab   : > { %1410 = vpow2.f32 %v452_v22  ;;  %568 = vmax.xlane.f32.xlu2 %v564_v23 }
 0x1b0   : > { %v708_v25 = vpop.f32.mrf.mxu3 }
 0x1b1   : > { %v1411_v26 = vpop.eup %1410  ;;  %v709_v27 = vadd.f32 %v708_v25, %v1705_v55 }
 0x1b2   : > { %456 = vadd.xlane.f32.xlu0 %v1411_v26 }
 0x1b3   : > { %713 = vmax.xlane.f32.xlu2 %v709_v27 }
 0x1b8   : > { %v710_v28 = vpop.f32.mrf.mxu3 }
 0x1b9   : > { %v711_v29 = vadd.f32 %v710_v28, %v1705_v55 }
 0x1bb   : > { %715 = vmax.xlane.f32.xlu2 %v711_v29 }
 0x1c0   : > { %v855_v30 = vpop.f32.mrf.mxu3 }
 0x1c1   : > { %v856_v31 = vadd.f32 %v855_v30, %v1705_v55 }
 0x1c3   : > { %860 = vmax.xlane.f32.xlu2 %v856_v31  ;;  %919 = vrot.lane.b32.xlu1 %v1332_v35, %s1520_s22 }
 0x1c8   : > { %v857_v32 = vpop.f32.mrf.mxu3 }
 0x1c9   : > { %v858_v33 = vadd.f32 %v857_v32, %v1705_v55 }
 0x1cb   : > { %862 = vmax.xlane.f32.xlu0 %v858_v33 }
 0x1df   : > { %627 = vrot.lane.b32.xlu0 %v1317_v34, %s1521_s19 }
 0x216   : > { %v567_v36 = vpop.xlane.xlu2 %566 }
 0x217   : > { %v570_v37 = vsub.f32 %v562_v17, %v567_v36 }
 0x219   : > { %v572_v38 = vmul.f32 1.442695, %v570_v37 }
 0x21b   : > { %1412 = vpow2.f32 %v572_v38 }
 0x21d   : > { %v455_v42 = vpop.xlane.xlu1 %454 }
 0x21e   : > { %v569_v39 = vpop.xlane.xlu2 %568 }
 0x21f   : > { %v571_v40 = vsub.f32 %v564_v23, %v569_v39 }
 0x221   : > { %v1723_v41 = vpop.eup %1412  ;;  %v574_v43 = vmul.f32 1.442695, %v571_v40 }
 0x222   : > { %576 = vadd.xlane.f32.xlu0 %v1723_v41 }
 0x223   : > { %1414 = vpow2.f32 %v574_v43  ;;  %v1340_v43 = vld [vmem:[%s1796_s5] sm:$0xff] }
 0x224   : > { %1416 = vrcp.f32 %v455_v42 }
 0x225   : > { %v457_v44 = vpop.xlane.xlu0 %456 }
 0x226   : > { %1418 = vrcp.f32 %v457_v44  ;;  %v714_v45 = vpop.xlane.xlu2 %713 }
 0x227   : > { %v717_v46 = vsub.f32 %v709_v27, %v714_v45 }
 0x229   : > { %v1415_v47 = vpop.eup %1414  ;;  %v719_v48 = vmul.f32 1.442695, %v717_v46 }
 0x22a   : > { %v1417_v49 = vpop.eup %1416  ;;  %578 = vadd.xlane.f32.xlu2 %v1415_v47 }
 0x22b   : > { %1420 = vpow2.f32 %v719_v48  ;;  %v460_v51 = vmul.f32 %v1417_v49, %v1409_v21 }
 0x22c   : > { %v1419_v50 = vpop.eup %1418 }
 0x22d   : > { %v461_v52 = vmul.f32 %v1419_v50, %v1411_v26 }
 0x22e   : > { %v716_v53 = vpop.xlane.xlu2 %715 }
 0x22f   : > { %v718_v54 = vsub.f32 %v711_v29, %v716_v53  ;;  %v462_v55 = vpack.c.bf16 %v461_v52, %v460_v51  ;;  %v1407_v51 = vld [vmem:[%s1797_s6] ss:$0 sm:$0xff] }
 0x231   : > { %v1726_v56 = vpop.eup %1420  ;;  %v721_v57 = vmul.f32 1.442695, %v718_v54  ;;  %519 = vmatmul.bf16.vlgmr.msra.gmra.mxu2 %v462_v55 }
 0x232   : > { %723 = vadd.xlane.f32.xlu2 %v1726_v56 }
 0x233   : > { %1422 = vpow2.f32 %v721_v57 }
 0x235   : > { %v920_v7 = vpop.permute.xlu1 %919 }
 0x236   : > { %v861_v58 = vpop.xlane.xlu2 %860  ;;  %772 = vrot.lane.b32.xlu0 %v1324_v2, %s1522_s23  ;;  %950 = vmatpush.bf16.msrb.mxu2 %v920_v7 }
 0x237   : > { %v864_v59 = vsub.f32 %v856_v31, %v861_v58 }
 0x239   : > { %v1423_v60 = vpop.eup %1422  ;;  %v866_v61 = vmul.f32 1.442695, %v864_v59 }
 0x23a   : > { %725 = vadd.xlane.f32.xlu2 %v1423_v60 }
 0x23b   : > { %1424 = vpow2.f32 %v866_v61 }
 0x23e   : > { %v863_v62 = vpop.xlane.xlu0 %862 }
 0x23f   : > { %v865_v63 = vsub.f32 %v858_v33, %v863_v62 }
 0x241   : > { %v1425_v0 = vpop.eup %1424  ;;  %v868_v1 = vmul.f32 1.442695, %v865_v63 }
 0x242   : > { %870 = vadd.xlane.f32.xlu2 %v1425_v0 }
 0x243   : > { %1426 = vpow2.f32 %v868_v1 }
 0x249   : > { %v1427_v3 = vpop.eup %1426 }
 0x24a   : > { %872 = vadd.xlane.f32.xlu1 %v1427_v3 }
 0x251   : > { %v628_v4 = vpop.permute.xlu0 %627 }
 0x252   : > { %655 = vmatpush.bf16.msrb.mxu1 %v628_v4 }
 0x25a   : > { %625 = vrot.lane.b32.xlu2 %v1316_v5, %s1521_s19  ;;  %s1342_s19 = sshll.u32 %s1510_s27, 4 }
 0x25b   : > { %s1024_s12 = scalar_lea.hbm %s1798_s7, %s1342_s19  ;;  %s1460_s19 = scalar_lea.hbm %s1798_s7, 32 }
 0x25c   : > { %s1027_s16 = sshll.u32 %s1024_s12, 4  ;;  %s1028_s16 = int_to_ptr.hbm [resolvable:$true] %s1027_s16 }
 0x25d   : > { %s1454_s21 = sshra.s32 %s1028_s16, 4  ;;  %s1455_s21 = int_to_ptr.hbm [resolvable:$true] %s1454_s21 }
 0x25e   : > { %s1456_s27 = scalar_lea.hbm %s1455_s21, 16  ;;  %p1461_p1 = scmp.lt.s32.totalorder %s1455_s21, %s1798_s7 }
 0x25f   : > { %p1457_p12 = scmp.ne.s32.totalorder %s1455_s21, %s1456_s27  ;;  %p1462_p2 = scmp.lt.s32.totalorder %s1460_s19, %s1456_s27 }
 0x261   : > { %p1458_p13 = pnand %p1457_p12, %p1608_p4  ;;  %p1463_p3 = por %p1462_p2, %p1461_p1 }
 0x263   : > { %774 = vrot.lane.b32.xlu1 %v1325_v6, %s1522_s23  ;;  %s326_s23 = scalar_lea.vmem [#allocation3], %s1136_s20  ;;  %p1459_p0 = pneg %p1458_p13 }
 0x264   : > { %s1025_s15 = sshll.u32 %s326_s23, 4  ;;  %s1026_s15 = int_to_ptr.vmem [resolvable:$true] %s1025_s15 }
 0x265   : > { %p1464_p5 = pnand %p1463_p3, %p1459_p0 }
 0x295   : > { %v577_v11 = vpop.xlane.xlu0 %576 }
 0x29d   : > { %v579_v8 = vpop.xlane.xlu2 %578 }
 0x29e   : > { %1428 = vrcp.f32 %v579_v8 }
 0x29f   : > { %1430 = vrcp.f32 %v577_v11 }
 0x2a4   : > { %v1429_v14 = vpop.eup %1428 }
 0x2a5   : > { %v724_v9 = vpop.xlane.xlu2 %723  ;;  %v1431_v15 = vpop.eup %1430  ;;  %v583_v16 = vmul.f32 %v1429_v14, %v1415_v47 }
 0x2a6   : > { %v582_v20 = vmul.f32 %v1431_v15, %v1723_v41  ;;  %v1341_v41 = vld [vmem:[%s1796_s5 + $0x8] sm:$0xff] }
 0x2a8   : > { %v584_v21 = vpack.c.bf16 %v583_v16, %v582_v20  ;;  %v773_v30 = vpop.permute.xlu0 %772 }
 0x2ad   : > { %v726_v10 = vpop.xlane.xlu2 %725 }
 0x2b4   : > { %v520_v12 = vpop.f32.mrf.mxu2 }
 0x2b5   : > { %525 = vst.msk [vmem:[#allocation2] sm:$0xff] %vm422_vm2, %v520_v12  ;;  %v871_v13 = vpop.xlane.xlu2 %870 }
 0x2b6   : > { %1432 = vrcp.f32 %v871_v13 }
 0x2bc   : > { %v522_v17 = vpop.f32.mrf.mxu2  ;;  %v1433_v22 = vpop.eup %1432 }
 0x2bd   : > { %526 = vst.msk [vmem:[#allocation2 + $0x8] sm:$0xff] %vm422_vm2, %v522_v17  ;;  %v626_v18 = vpop.permute.xlu2 %625  ;;  %v873_v19 = vpop.xlane.xlu1 %872  ;;  %v876_v24 = vmul.f32 %v1433_v22, %v1425_v0 }
 0x2be   : > { %1434 = vrcp.f32 %v873_v19  ;;  %656 = vmatpush.bf16.msrb.mxu1 %v626_v18 }
 0x2bf   : > { %1436 = vrcp.f32 %v726_v10 }
 0x2c0   : > { %1438 = vrcp.f32 %v724_v9 }
 0x2c1   : > { %657 = vmatmul.bf16.vlgmr.msrb.gmra.mxu1 %v584_v21 }
 0x2c2   : > { %1000 = vmatpush.bf16.msra.mxu1 %v1341_v41 }
 0x2c4   : > { %v1435_v23 = vpop.eup %1434 }
 0x2c5   : > { %v877_v25 = vmul.f32 %v1435_v23, %v1427_v3  ;;  %v1437_v27 = vpop.eup %1436 }
 0x2c6   : > { %v1439_v29 = vpop.eup %1438  ;;  %v730_v31 = vmul.f32 %v1437_v27, %v1423_v60  ;;  %1001 = vmatpush.bf16.msra.mxu1 %v1340_v43 }
 0x2c7   : > { %v878_v26 = vpack.c.bf16 %v877_v25, %v876_v24  ;;  %v729_v32 = vmul.f32 %v1439_v29, %v1726_v56 }
 0x2c9   : > { %951 = vmatmul.bf16.vlgmr.msrb.gmra.mxu2 %v878_v26  ;;  %v731_v33 = vpack.c.bf16 %v730_v31, %v729_v32 }
 0x2d5   : > { %v775_v28 = vpop.permute.xlu1 %774 }
 0x2d6   : > { %802 = vmatpush.bf16.msrb.mxu0 %v775_v28 }
 0x2da   : > { %803 = vmatpush.bf16.msrb.mxu0 %v773_v30 }
 0x2dd   : > { %804 = vmatmul.bf16.vlgmr.msrb.gmra.mxu0 %v731_v33 }
 0x33e   : > { %v658_v34 = vpop.f32.mrf.mxu1 }
 0x33f   : > { %665 = vrot.lane.b32.xlu1 %v658_v34, %s1524_s30 }
 0x346   : > { %v660_v35 = vpop.f32.mrf.mxu1 }
 0x347   : > { %667 = vrot.lane.b32.xlu2 %v660_v35, %s1524_s30 }
 0x34c   : > { %v952_v36 = vpop.f32.mrf.mxu2 }
 0x34f   : > { %959 = vrot.lane.b32.xlu2 %v952_v36, %s1525_s8 }
 0x354   : > { %v954_v38 = vpop.f32.mrf.mxu2 }
 0x35a   : > { %v805_v37 = vpop.f32.mrf.mxu0 }
 0x35b   : > { %812 = vrot.lane.b32.xlu0 %v805_v37, %s1526_s10 }
 0x362   : > { %v807_v39 = vpop.f32.mrf.mxu0 }
 0x363   : > { %961 = vrot.lane.b32.xlu0 %v954_v38, %s1525_s8  ;;  %814 = vrot.lane.b32.xlu1 %v807_v39, %s1526_s10 }
 0x3a1   : > { %v668_v40 = vpop.permute.xlu2 %667 }
 0x3a2   : > { %673 = vst.msk [vmem:[#allocation2 + $0x8] sm:$0xff] %vm671_vm4, %v668_v40 }
 0x3a9   : > { %v960_v45 = vpop.permute.xlu2 %959 }
 0x3b1   : > { %v666_v42 = vpop.permute.xlu1 %665 }
 0x3b2   : > { %672 = vst.msk [vmem:[#allocation2] sm:$0xff] %vm671_vm4, %v666_v42 }
 0x3cd   : > { %v813_v44 = vpop.permute.xlu0 %812 }
 0x3ce   : > { %819 = vst.msk [vmem:[#allocation2] sm:$0xff] %vm818_vm5, %v813_v44 }
 0x3cf   : > { %966 = vst.msk [vmem:[#allocation2] sm:$0xff] %vm965_vm6, %v960_v45 }
 0x3d5   : > { %v962_v46 = vpop.permute.xlu0 %961  ;;  %v815_v47 = vpop.permute.xlu1 %814 }
 0x3d6   : > { %820 = vst.msk [vmem:[#allocation2 + $0x8] sm:$0xff] %vm818_vm5, %v815_v47  ;;  %v968_v48 = vld [vmem:[#allocation2] sm:$0xff] }
 0x3d7   : > { %967 = vst.msk [vmem:[#allocation2 + $0x8] sm:$0xff] %vm965_vm6, %v962_v46 }
 0x3de   : > { %v969_v49 = vld [vmem:[#allocation2 + $0x8] sm:$0xff] }
 0x3df   : > { %v970_v50 = vpack.c.bf16 %v969_v49, %v968_v48 }
 0x3e1   : > { %1296 = vmatmul.msk.bf16.vlgmr.msra.gmra.mxu1 %vm376_vm0, %v970_v50 }
 0x45e   : > { %v1003_v52 = vpop.f32.mrf.mxu1 }
 0x45f   : > { %v1004_v53 = vadd.f32 %v1407_v51, %v1003_v52 }
 0x461   : > { %1008 = vst.msk [vmem:[%s326_s23] sm:$0xff] %vm376_vm0, %v1004_v53 }
 0x466   : > { %v1005_v54 = vpop.f32.mrf.mxu1 }
 0x467   : > { %v1006_v55 = vadd.f32 %v1407_v51, %v1005_v54 }
 0x469   : > { %1009 = vst.msk [vmem:[%s326_s23 + $0x8] sm:$0xff] %vm376_vm0, %v1006_v55 }
 0x46a   : > { %1467 = shalt.err (!%p1464_p5)
}
 0x46b   : > { %s1527_s18 = smov 128  }
 0x46c   : > { %1343 = dma.vmem_to_hbm [thread:$0]  (%p1608_p4), %s1026_s15, 256, %s1028_s16, %s1011_s17, %s1527_s18, %s1527_s18, %s1524_s30  }
 0x46d PF: > { %p1349_p6 = scmp.ge.s32.totalorder %s1518_s29, 2  ;;  %s1042_s23 = sand.u32 1, %s1498_s24  }
 0x46e   : > { %s1043_s12 = scalar_lea.sflag [#allocation4], %s1042_s23 }
 0x46f   : > { %p1346_p7 = pnand %p1349_p6, %p1615_p8 }
 0x471   : > { %p1347_p9 = pneg %p1346_p7 }
 0x473   : > { %1493 = dma.done.wait (%p1347_p9), %s1043_s12, 256  }
 0x474   : > { %1495 = vsyncadd (%p1347_p9), %s1043_s12, 4294967040  ;;  %s20_s29 = sadd.s32 1, %s1518_s29   ;;  %s1801_s24 = smov %s1502_s25 }
 0x475   : > { %p17_p10 = scmp.ge.s32.totalorder %s20_s29, 4   ;;  %s1802_s25 = smov %s1506_s26 }
 0x476   : > { %s1803_s26 = smov %s1621_s14  ;;  %s1804_s27 = smov %s1514_s28 }
 0x477   : > { %s1805_s28 = smov %s1807_s9  ;;  %19 = sbr.rel (!%p17_p10) target bundleno = 4 (0x4), region = 89 }
 0x47c   :  { %1049 = vsyncpa [#allocation4], 1 }
 0x47d   :  { %1051 = vsyncpa [#allocation4 + $0x1], 1 }

</bundles_post_ra>
